<compile_context>
chip_gen: v6e
topology: v6e:2x2x1
jax: 0.10.0
libtpu: 0.0.40
codegen_flags: <defaults>
</compile_context>

<pallas_src>
import functools

import jax
import jax.numpy as jnp
from jax import lax
from jax.experimental import pallas as pl
from jax.experimental.pallas import tpu as pltpu


def _pixel_shuffle_kernel(x_ref, r_ref, o_ref, *, s: int, wc: int):
    # x_ref: (1, cb*s*s, hb, W)        -- inputs for cb fused output channels
    # r_ref: (s*wc, s*wc)              -- resident 0/1 interleave matrix
    # o_ref: (1, cb, hb, s*s*W)        -- lane-major output slab (free reshape
    #                                     to (hb*s, W*s) outside the kernel)
    cb = o_ref.shape[1]
    w = x_ref.shape[3]
    ws = w * s
    swc = s * wc
    nc = w // wc

    r = r_ref[...]
    # If the chunk width is a multiple of 128 lanes, per-chunk stores are
    # already aligned + unmasked; otherwise assemble one lane-dense row per
    # output channel and store it once.
    dense_direct = (swc % 128 == 0)

    for cbi in range(cb):          # static unroll, bounded by _choose_blocks
        base = cbi * s * s
        pieces = []
        for si in range(s):
            for ci in range(nc):
                if nc == 1:
                    planes = [x_ref[0, base + si * s + sj, :, :] for sj in range(s)]
                else:
                    planes = [
                        x_ref[0, base + si * s + sj, :, pl.ds(ci * wc, wc)]
                        for sj in range(s)
                    ]
                # One fused contraction (K = s*wc) instead of s dots + adds.
                a = jnp.concatenate(planes, axis=-1)
                piece = jnp.dot(
                    a,
                    r,
                    precision=lax.Precision.HIGHEST,
                    preferred_element_type=jnp.float32,
                ).astype(o_ref.dtype)
                if dense_direct:
                    o_ref[0, cbi, :, pl.ds(si * ws + ci * swc, swc)] = piece
                else:
                    pieces.append(piece)
        if not dense_direct:
            o_ref[0, cbi, :, :] = jnp.concatenate(pieces, axis=-1)


def _vmem_capacity_bytes() -> int:
    try:
        cap = int(pltpu.get_tpu_info().vmem_capacity_bytes)
        if cap > 0:
            return cap
    except Exception:
        pass
    return 64 * 1024 * 1024  # conservative fallback: v7x physical per-TC VMEM


def _choose_wc(w: int, s: int, itemsize: int) -> int:
    """Contraction chunk along W: bound MXU work at s*wc MACs/element so the
    kernel stays HBM-bound on all generations (v5e has the weakest MXU, v7x the
    fastest HBM).  Prefer 128-lane aligned chunks for unmasked stores."""
    max_k = 128 if itemsize >= 4 else 256
    cands = [d for d in range(1, w + 1) if w % d == 0 and s * d <= max_k]
    if not cands:
        return w
    wc = max(cands, key=lambda d: ((s * d) % 128 == 0, d))
    if s * wc < 64:  # pathological W (e.g. prime): chunking not worth it
        wc = w
    return wc


def _choose_blocks(b, c_out, s, h, w, wc, itemsize, budget_bytes):
    nc = w // wc
    swc = s * wc
    # Sublane packing: 8 rows (f32), 16 (bf16/f16), 32 (int8/fp8).
    pack = {4: 8, 2: 16, 1: 32}.get(itemsize, 8)

    def step_bytes(cb, hb):
        io = 4 * cb * s * s * hb * w * itemsize      # in + out blocks, double-buffered
        r_res = 2 * swc * swc * itemsize             # resident interleave matrix
        tmp = hb * swc * (itemsize + 4)              # concat tile + f32 dot result
        tmp += hb * s * s * w * itemsize             # assembled per-channel row
        return io + r_res + tmp

    # H tile: divisor of H that is a multiple of the sublane packing (or H
    # itself, which also satisfies the (8,128) block rule).  Largest that fits.
    hb_cands = sorted({d for d in range(pack, h + 1, pack) if h % d == 0} | {h})
    hb = hb_cands[0]
    for cand in hb_cands:
        if step_bytes(1, cand) <= budget_bytes:
            hb = cand

    # Channel fusion: largest divisor of c_out fitting the budget while
    # bounding the static unroll (cb * s * nc matmuls per grid step).
    cb = 1
    for d in range(1, c_out + 1):
        if c_out % d == 0 and d * s * nc <= 64 and step_bytes(d, hb) <= budget_bytes:
            cb = d

    # v7x has 2 TensorCores fed via the "parallel" grid axes: keep >= 2 grid
    # steps when the problem allows it (no-op on the usual b >= 2 case).
    def n_steps(cb_, hb_):
        return b * (c_out // cb_) * (h // hb_)

    if n_steps(cb, hb) < 2:
        smaller_hb = [d for d in hb_cands if h // d >= 2]
        if smaller_hb:
            hb = max(smaller_hb)
        else:
            cands = [d for d in range(1, cb) if c_out % d == 0]
            if cands:
                cb = max(cands)
    return cb, hb


def pixel_shuffle(x: jax.Array, upscale_factor: int) -> jax.Array:
    b, c, h, w = x.shape
    s = int(upscale_factor)
    if s == 1:
        return x
    assert c % (s * s) == 0, "channels must be divisible by upscale_factor**2"
    if not jnp.issubdtype(x.dtype, jnp.floating):
        # TODO(synk): integer dtypes need a non-MXU data-movement path.
        raise NotImplementedError("pixel_shuffle Pallas kernel supports float dtypes only")

    c_out = c // (s * s)
    itemsize = jnp.dtype(x.dtype).itemsize
    wc = _choose_wc(w, s, itemsize)
    swc = s * wc

    # Generation-aware VMEM budgeting with an explicit limit (v5e/v6e: 128 MiB
    # physical with 16/32 MiB scoped defaults; v7x: 64 MiB physical).
    cap = _vmem_capacity_bytes()
    vmem_limit = min((3 * cap) // 4, 96 * 1024 * 1024)
    budget = max(min(vmem_limit - (8 << 20), 48 << 20), 4 << 20)
    cb, hb = _choose_blocks(b, c_out, s, h, w, wc, itemsize, budget)
    grid = (b, c_out // cb, h // hb)

    # Interleave matrix R[k, t] = 1 iff t == (k % wc)*s + (k // wc), i.e. the
    # (sj, wl) -> (wl*s + sj) lane shuffle.  Same matrix for every channel, si
    # and W-chunk; kept in x.dtype (0/1 is exact) so no per-step converts.
    # (Storing it in bf16 would halve its footprint but force a cast per use.)
    kk = jnp.arange(swc, dtype=jnp.int32)
    tt = jnp.arange(swc, dtype=jnp.int32)
    r = ((kk[:, None] % wc) * s + (kk[:, None] // wc) == tt[None, :]).astype(x.dtype)

    kernel = functools.partial(_pixel_shuffle_kernel, s=s, wc=wc)

    out_lane_major = pl.pallas_call(
        kernel,
        out_shape=jax.ShapeDtypeStruct((b, c_out, h, s * s * w), x.dtype),
        grid_spec=pltpu.PrefetchScalarGridSpec(
            num_scalar_prefetch=0,
            grid=grid,
            in_specs=[
                pl.BlockSpec(
                    (1, cb * s * s, hb, w), lambda bi, ci, hi: (bi, ci, hi, 0)
                ),
                # Constant index_map: R's block stays resident across steps.
                pl.BlockSpec((swc, swc), lambda bi, ci, hi: (0, 0)),
            ],
            out_specs=pl.BlockSpec(
                (1, cb, hb, s * s * w), lambda bi, ci, hi: (bi, ci, hi, 0)
            ),
        ),
        compiler_params=pltpu.CompilerParams(
            dimension_semantics=("parallel", "parallel", "parallel"),
            vmem_limit_bytes=int(vmem_limit),
        ),
    )(x, r)

    # Contiguous (free) reshape: (B, C_out, H, s*s*W) -> (B, C_out, H*s, W*s).
    return out_lane_major.reshape(b, c_out, h * s, w * s)


def pixel_shuffle_ref(x: jax.Array, s: int) -> jax.Array:
    # Pure-JAX reference mirroring the PyTorch reshape/permute/reshape.
    b, c, h, w = x.shape
    co = c // (s * s)
    y = x.reshape(b, co, s, s, h, w)
    y = jnp.transpose(y, (0, 1, 4, 2, 5, 3))
    return y.reshape(b, co, h * s, w * s)


if __name__ == "__main__":
    key = jax.random.PRNGKey(0)

    # Primary test: matches the shapes the module implies (B=2, C=8, 16x16, s=2).
    x = jax.random.normal(key, (2, 8, 16, 16), dtype=jnp.float32)
    out = jax.block_until_ready(pixel_shuffle(x, 2))
    ref = pixel_shuffle_ref(x, 2)
    assert out.shape == ref.shape == (2, 2, 32, 32), (out.shape, ref.shape)
    assert bool(jnp.array_equal(out, ref)), "PixelShuffle f32 s=2 mismatch"

    # bf16 path (sublane packing 16) -- 0/1 scatter is exact for bf16 too.
    xb = jax.random.normal(jax.random.PRNGKey(1), (2, 8, 16, 16), dtype=jnp.bfloat16)
    outb = jax.block_until_ready(pixel_shuffle(xb, 2))
    assert bool(jnp.array_equal(outb, pixel_shuffle_ref(xb, 2))), "bf16 s=2 mismatch"

    # Odd upscale factor.
    x3 = jax.random.normal(jax.random.PRNGKey(2), (1, 9, 8, 8), dtype=jnp.float32)
    out3 = jax.block_until_ready(pixel_shuffle(x3, 3))
    assert out3.shape == (1, 1, 24, 24)
    assert bool(jnp.array_equal(out3, pixel_shuffle_ref(x3, 3))), "f32 s=3 mismatch"

    print("KERNEL_OK")
</pallas_src>

<mosaic_0001>
module attributes {stable_mosaic.version = 11 : i64} {
  func.func @_pixel_shuffle_kernel(%arg0: i32, %arg1: i32, %arg2: i32, %arg3: memref<1x8x16x16xf32, #tpu.memory_space<vmem>>, %arg4: memref<32x32xf32, #tpu.memory_space<vmem>>, %arg5: memref<1x2x16x64xf32, #tpu.memory_space<vmem>>) attributes {dimension_semantics = [#tpu.dimension_semantics<parallel>, #tpu.dimension_semantics<parallel>, #tpu.dimension_semantics<parallel>], iteration_bounds = array<i64: 2, 1, 1>, scalar_prefetch = 0 : i64, scratch_operands = 0 : i64, tpu.core_type = #tpu.core_type<tc>, window_params = [{transform_indices = @transform_0, window_bounds = array<i64: 1, 8, 16, 16>}, {pipeline_mode = #tpu.pipeline_mode<synchronous>, transform_indices = @transform_1, window_bounds = array<i64: 32, 32>}, {transform_indices = @transform_2, window_bounds = array<i64: 1, 2, 16, 64>}]} {
    %c0 = arith.constant 0 : index
    %c0_0 = arith.constant 0 : index
    %0 = vector.load %arg4[%c0, %c0_0] : memref<32x32xf32, #tpu.memory_space<vmem>>, vector<32x32xf32>
    %c0_1 = arith.constant 0 : index
    %c0_2 = arith.constant 0 : index
    %c0_3 = arith.constant 0 : index
    %c0_4 = arith.constant 0 : index
    %1 = vector.load %arg3[%c0_1, %c0_2, %c0_3, %c0_4] : memref<1x8x16x16xf32, #tpu.memory_space<vmem>>, vector<1x1x16x16xf32>
    %2 = vector.shape_cast %1 : vector<1x1x16x16xf32> to vector<16x16xf32>
    %c0_5 = arith.constant 0 : index
    %c1 = arith.constant 1 : index
    %c0_6 = arith.constant 0 : index
    %c0_7 = arith.constant 0 : index
    %3 = vector.load %arg3[%c0_5, %c1, %c0_6, %c0_7] : memref<1x8x16x16xf32, #tpu.memory_space<vmem>>, vector<1x1x16x16xf32>
    %4 = vector.shape_cast %3 : vector<1x1x16x16xf32> to vector<16x16xf32>
    %5 = tpu.concatenate %2, %4 in 1 : vector<16x16xf32>, vector<16x16xf32> -> vector<16x32xf32>
    %cst = arith.constant dense<0.000000e+00> : vector<16x32xf32>
    %6 = tpu.matmul %5, %0, %cst {dimension_numbers = #tpu.dot_dimension_numbers<[1], [0], [0], [1], [0, 0, 1, 1], [], []>, precision = #tpu.contract_precision<fp32>} : vector<16x32xf32>, vector<32x32xf32>, vector<16x32xf32> -> vector<16x32xf32>
    %c0_8 = arith.constant 0 : index
    %c2 = arith.constant 2 : index
    %c0_9 = arith.constant 0 : index
    %c0_10 = arith.constant 0 : index
    %7 = vector.load %arg3[%c0_8, %c2, %c0_9, %c0_10] : memref<1x8x16x16xf32, #tpu.memory_space<vmem>>, vector<1x1x16x16xf32>
    %8 = vector.shape_cast %7 : vector<1x1x16x16xf32> to vector<16x16xf32>
    %c0_11 = arith.constant 0 : index
    %c3 = arith.constant 3 : index
    %c0_12 = arith.constant 0 : index
    %c0_13 = arith.constant 0 : index
    %9 = vector.load %arg3[%c0_11, %c3, %c0_12, %c0_13] : memref<1x8x16x16xf32, #tpu.memory_space<vmem>>, vector<1x1x16x16xf32>
    %10 = vector.shape_cast %9 : vector<1x1x16x16xf32> to vector<16x16xf32>
    %11 = tpu.concatenate %8, %10 in 1 : vector<16x16xf32>, vector<16x16xf32> -> vector<16x32xf32>
    %cst_14 = arith.constant dense<0.000000e+00> : vector<16x32xf32>
    %12 = tpu.matmul %11, %0, %cst_14 {dimension_numbers = #tpu.dot_dimension_numbers<[1], [0], [0], [1], [0, 0, 1, 1], [], []>, precision = #tpu.contract_precision<fp32>} : vector<16x32xf32>, vector<32x32xf32>, vector<16x32xf32> -> vector<16x32xf32>
    %13 = tpu.concatenate %6, %12 in 1 : vector<16x32xf32>, vector<16x32xf32> -> vector<16x64xf32>
    %c0_15 = arith.constant 0 : index
    %c0_16 = arith.constant 0 : index
    %c0_17 = arith.constant 0 : index
    %c0_18 = arith.constant 0 : index
    %14 = vector.load %arg5[%c0_15, %c0_16, %c0_17, %c0_18] : memref<1x2x16x64xf32, #tpu.memory_space<vmem>>, vector<1x1x16x64xf32>
    %15 = vector.shape_cast %14 : vector<1x1x16x64xf32> to vector<16x64xf32>
    %16 = vector.shape_cast %13 : vector<16x64xf32> to vector<1x1x16x64xf32>
    tpu.vector_store %arg5[%c0_15, %c0_16, %c0_17, %c0_18], %16 {strides = array<i32>} : memref<1x2x16x64xf32, #tpu.memory_space<vmem>>, vector<1x1x16x64xf32>,
    %c0_19 = arith.constant 0 : index
    %c4 = arith.constant 4 : index
    %c0_20 = arith.constant 0 : index
    %c0_21 = arith.constant 0 : index
    %17 = vector.load %arg3[%c0_19, %c4, %c0_20, %c0_21] : memref<1x8x16x16xf32, #tpu.memory_space<vmem>>, vector<1x1x16x16xf32>
    %18 = vector.shape_cast %17 : vector<1x1x16x16xf32> to vector<16x16xf32>
    %c0_22 = arith.constant 0 : index
    %c5 = arith.constant 5 : index
    %c0_23 = arith.constant 0 : index
    %c0_24 = arith.constant 0 : index
    %19 = vector.load %arg3[%c0_22, %c5, %c0_23, %c0_24] : memref<1x8x16x16xf32, #tpu.memory_space<vmem>>, vector<1x1x16x16xf32>
    %20 = vector.shape_cast %19 : vector<1x1x16x16xf32> to vector<16x16xf32>
    %21 = tpu.concatenate %18, %20 in 1 : vector<16x16xf32>, vector<16x16xf32> -> vector<16x32xf32>
    %cst_25 = arith.constant dense<0.000000e+00> : vector<16x32xf32>
    %22 = tpu.matmul %21, %0, %cst_25 {dimension_numbers = #tpu.dot_dimension_numbers<[1], [0], [0], [1], [0, 0, 1, 1], [], []>, precision = #tpu.contract_precision<fp32>} : vector<16x32xf32>, vector<32x32xf32>, vector<16x32xf32> -> vector<16x32xf32>
    %c0_26 = arith.constant 0 : index
    %c6 = arith.constant 6 : index
    %c0_27 = arith.constant 0 : index
    %c0_28 = arith.constant 0 : index
    %23 = vector.load %arg3[%c0_26, %c6, %c0_27, %c0_28] : memref<1x8x16x16xf32, #tpu.memory_space<vmem>>, vector<1x1x16x16xf32>
    %24 = vector.shape_cast %23 : vector<1x1x16x16xf32> to vector<16x16xf32>
    %c0_29 = arith.constant 0 : index
    %c7 = arith.constant 7 : index
    %c0_30 = arith.constant 0 : index
    %c0_31 = arith.constant 0 : index
    %25 = vector.load %arg3[%c0_29, %c7, %c0_30, %c0_31] : memref<1x8x16x16xf32, #tpu.memory_space<vmem>>, vector<1x1x16x16xf32>
    %26 = vector.shape_cast %25 : vector<1x1x16x16xf32> to vector<16x16xf32>
    %27 = tpu.concatenate %24, %26 in 1 : vector<16x16xf32>, vector<16x16xf32> -> vector<16x32xf32>
    %cst_32 = arith.constant dense<0.000000e+00> : vector<16x32xf32>
    %28 = tpu.matmul %27, %0, %cst_32 {dimension_numbers = #tpu.dot_dimension_numbers<[1], [0], [0], [1], [0, 0, 1, 1], [], []>, precision = #tpu.contract_precision<fp32>} : vector<16x32xf32>, vector<32x32xf32>, vector<16x32xf32> -> vector<16x32xf32>
    %29 = tpu.concatenate %22, %28 in 1 : vector<16x32xf32>, vector<16x32xf32> -> vector<16x64xf32>
    %c0_33 = arith.constant 0 : index
    %c1_34 = arith.constant 1 : index
    %c0_35 = arith.constant 0 : index
    %c0_36 = arith.constant 0 : index
    %30 = vector.load %arg5[%c0_33, %c1_34, %c0_35, %c0_36] : memref<1x2x16x64xf32, #tpu.memory_space<vmem>>, vector<1x1x16x64xf32>
    %31 = vector.shape_cast %30 : vector<1x1x16x64xf32> to vector<16x64xf32>
    %32 = vector.shape_cast %29 : vector<16x64xf32> to vector<1x1x16x64xf32>
    tpu.vector_store %arg5[%c0_33, %c1_34, %c0_35, %c0_36], %32 {strides = array<i32>} : memref<1x2x16x64xf32, #tpu.memory_space<vmem>>, vector<1x1x16x64xf32>,
    return
  }
  func.func @transform_0(%arg0: i32, %arg1: i32, %arg2: i32) -> (i32, i32, i32, i32) {
    %c0_i32 = arith.constant 0 : i32
    %c0_i32_0 = arith.constant 0 : i32
    return %arg0, %arg1, %arg2, %c0_i32 : i32, i32, i32, i32
  }
  func.func @transform_1(%arg0: i32, %arg1: i32, %arg2: i32) -> (i32, i32) {
    %c0_i32 = arith.constant 0 : i32
    %c0_i32_0 = arith.constant 0 : i32
    %c0_i32_1 = arith.constant 0 : i32
    return %c0_i32, %c0_i32_0 : i32, i32
  }
  func.func @transform_2(%arg0: i32, %arg1: i32, %arg2: i32) -> (i32, i32, i32, i32) {
    %c0_i32 = arith.constant 0 : i32
    %c0_i32_0 = arith.constant 0 : i32
    return %arg0, %arg1, %arg2, %c0_i32 : i32, i32, i32, i32
  }
}

</mosaic_0001>

<bundles_post_ra>
// kernel: tpu_custom_call.1
= control target key start
LH: loop header
LB: loop body
LE: loop exit
PB: predicated region body
PF: predicated region fallthrough
CT: control target
= control target key end

     0   :  { %7 = vsyncpa [#allocation3], 0  ;;  %s3798_s0 = inlined_call_operand.hbm [shape: f32[2,8,16,16], index: 0, kind: input, shape index: {}]   ;;  %s3799_s1 = inlined_call_operand.hbm [shape: f32[32,32], index: 1, kind: input, shape index: {}]   ;;  %s3800_s2 = inlined_call_operand.hbm [shape: f32[2,2,16,64], index: 2, kind: output, shape index: {}]  }
   0x1   :  { %9 = vsyncpa [#allocation3 + $0x1], 0 }
   0x2   :  { %10 = vsyncpa [#allocation6], 0 }
   0x3   :  { %11 = vsyncpa [#allocation4], 0 }
   0x4   :  { %13 = vsyncpa [#allocation4 + $0x1], 0  ;;  %s3253_s9 = smov 0   ;;  %s3255_s10 = smov 0  }
   0x5   :  { %s3257_s11 = smov 0   ;;  %s3259_s12 = smov 0  }
   0x6   :  { %s3261_s13 = smov 0   ;;  %s3263_s14 = smov 0  }
   0x7 LB: > { %s2567_s15 = sadd.s32 4294967295, %s3227_s14   ;;  %s2568_s16 = sadd.s32 4294967294, %s3227_s14   ;;  %s3227_s14 = sphi %s3263_s14, %s19_s14   ;;  %s3223_s13 = sphi %s3261_s13, %s3820_s13   ;;  %s3219_s12 = sphi %s3259_s12, %s3819_s12   ;;  %s3215_s11 = sphi %s3257_s11, %s3818_s11   ;;  %s3211_s10 = sphi %s3255_s10, %s3817_s10   ;;  %s3207_s9 = sphi %s3253_s9, %s3816_s9  }
   0x8   : > { %p62_p0 = scmp.ne.s32.totalorder %s3211_s10, %s3207_s9  ;;  %p3287_p1 = scmp.eq.s32.totalorder %s2567_s15, 0 }
   0x9   : > { %p3291_p2 = scmp.eq.s32.totalorder %s2567_s15, 1  ;;  %p117_p3 = scmp.eq.s32.totalorder %s2568_s16, 1 }
   0xa   : > { %p3297_p4 = por %p3287_p1, %p62_p0  ;;  %p2569_p5 = scmp.ge.s32.totalorder %s3227_s14, 1 }
   0xb   : > { %p3302_p6 = por %p117_p3, %p62_p0  ;;  %p124_p7 = scmp.lt.s32.totalorder %s3227_s14, 3 }
   0xc   : > { %s3805_s19 = scalar_select %p3297_p4, 1, 0 }
   0xd   : > { %s3806_s20 = scalar_select %p3302_p6, 1, 0 }
   0xe   : > { %p3307_p8 = pnand %p2569_p5, %p124_p7  ;;  %s3229_s22 = smov [#allocation5]  }
   0xf   : > { %s136_s23 = sshll.u32 %s3229_s22, 4  ;;  %s38_s25 = sadd.s32 1, %s3223_s13  ;;  %s137_s23 = int_to_ptr.vmem [resolvable:$true] %s136_s23 }
  0x10   : > { %p3018_p9 = pneg %p3307_p8  ;;  %s3100_s26 = scalar_lea.vmem %s137_s23, 512 }
  0x11   : > { %p3101_p13 = scmp.ne.s32.totalorder %s137_s23, %s3100_s26  ;;  %p3108_p5 = scmp.lt.s32.totalorder %s137_s23, %s137_s23 }
  0x12   : > { %p3316_p11 = pnand %p3018_p9, %p3287_p1  ;;  %p3109_p7 = scmp.lt.s32.totalorder %s3100_s26, %s3100_s26 }
  0x14   : > { %p3091_p12 = pneg %p3316_p11  ;;  %p3110_p6 = por %p3109_p7, %p3108_p5 }
  0x16   : > { %p3103_p0 = pnand %p3101_p13, %p3091_p12 }
  0x18   : > { %p3104_p3 = pneg %p3103_p0 }
  0x1a   : > { %p3111_p4 = pnand %p3110_p6, %p3104_p3 }
  0x1c   : > { %3114 = shalt.err (!%p3111_p4)
}
  0x1d   : > { %s3802_s27 = smov 128   ;;  %s3231_s28 = smov 8  }
  0x1e   : > { %3021 = dma.hbm_to_vmem [thread:$0]  (!%p3316_p11), %s3799_s1, 512, %s137_s23, [#allocation6], %s3802_s27, %s3802_s27, %s3231_s28  }
  0x1f   : > { %p40_p4 = scmp.ge.s32.totalorder %s38_s25, 2  ;;  %s49_s3 = sadd.s32 1, %s3215_s11 }
  0x20   : > { %p56_p6 = scmp.ne.s32.totalorder %s3215_s11, %s3211_s10  ;;  %p57_p9 = scmp.eq.s32.totalorder %s3227_s14, 0 }
  0x21   : > { %s3822_s25 = smov (%p40_p4, %s38_s25), 0  ;;  %p3031_p0 = scmp.lt.s32.totalorder %s3227_s14, 2 }
  0x22   : > { %p3337_p12 = por %p57_p9, %p56_p6  ;;  %p3343_p13 = por %p3291_p2, %p56_p6 }
  0x23   : > { %s42_s6 = ssub.s32 %s3223_s13, %s3822_s25  ;;  %s150_s7 = sand.u32 1, %s3215_s11  }
  0x24   : > { %p47_p11 = scmp.eq.s32.totalorder %s42_s6, 0  ;;  %s2572_s8 = sshll.u32 %s150_s7, 7 }
  0x25   : > { %s2600_s16 = sshll.u32 %s3223_s13, 11  ;;  %s154_s26 = scalar_lea.vmem [#allocation2], %s2572_s8 }
  0x26   : > { %s3352_s15 = scalar_select %p47_p11, %s3215_s11, %s49_s3  }
  0x27   : > { %s165_s24 = scalar_lea.hbm %s3798_s0, %s2600_s16  ;;  %s166_s29 = sshll.u32 %s154_s26, 4  ;;  %s167_s29 = int_to_ptr.vmem [resolvable:$true] %s166_s29 }
  0x28   : > { %p3360_p2 = pnand %p3031_p0, %p3337_p12  ;;  %s151_s30 = scalar_lea.sflag [#allocation3], %s150_s7 }
  0x29   : > { %s3128_s6 = scalar_lea.vmem %s167_s29, 2048  ;;  %s3232_s3 = smov [#allocation2]  }
  0x2a   : > { %p3117_p3 = pneg %p3360_p2  ;;  %p3129_p5 = scmp.ne.s32.totalorder %s167_s29, %s3128_s6 }
  0x2b   : > { %s3133_s27 = sshll.u32 %s3232_s3, 4  ;;  %s3134_s27 = int_to_ptr.vmem [resolvable:$false] %s3133_s27 }
  0x2c   : > { %p3131_p7 = pnand %p3129_p5, %p3117_p3  ;;  %s3135_s16 = scalar_lea.vmem %s3134_s27, 4096 }
  0x2d   : > { %p3136_p6 = scmp.lt.s32.totalorder %s167_s29, %s3134_s27  ;;  %p3137_p9 = scmp.lt.s32.totalorder %s3135_s16, %s3128_s6 }
  0x2e   : > { %p3132_p4 = pneg %p3131_p7 }
  0x2f   : > { %p3138_p11 = por %p3137_p9, %p3136_p6 }
  0x31   : > { %p3139_p10 = pnand %p3138_p11, %p3132_p4 }
  0x33   : > { %3142 = shalt.err (!%p3139_p10)
}
  0x34   : > { %s3812_s4 = smov 128   ;;  %178 = sbr.rel (%p3307_p8) target bundleno = 629 (0x275), region = 28 }
  0x35   : > { %3025 = dma.hbm_to_vmem [thread:$0]  (!%p3360_p2), %s165_s24, 2048, %s167_s29, %s151_s30, %s3812_s4, %s3812_s4, %s3231_s28  }
  0x36   : > { %s3374_s7 = sand.u32 (!%p3307_p8), 1, %s3211_s10   ;;  %p3813_p10 = scmp.ne.s32.totalorder (!%p3307_p8), %s3805_s19, 0 }
  0x37   : > { %s2576_s27 = sshll.u32 (!%p3307_p8), %s3374_s7, 7  ;;  %s181_s8 = scalar_lea.sflag (!%p3307_p8), [#allocation3], %s3374_s7 }
  0x38   : > { %s3378_s22 = scalar_lea.vmem (!%p3307_p8), [#allocation2], %s2576_s27 }
  0x39   : > { %3194 = dma.done.wait (%p3813_p10), %s181_s8, 2048  }
  0x3a   : > { %3196 = vsyncadd (%p3813_p10), %s181_s8, 4294965248 }
  0x3b   : > { %3198 = dma.done.wait (%p3287_p1), [#allocation6], 512  }
  0x3c   : > { %3200 = vsyncadd (%p3287_p1), [#allocation6], 4294966784  ;;  %v2579_v0 = vld [vmem:[%s3378_s22 + $0x10] sm:$0xff]  ;;  %s3233_s21 = smov 16   ;;  %v216_v2 = vld [vmem:[#allocation5 + $0x18] sm:$0xff]  ;;  %vm230_vm0 = vcmask 130048  }
  0x3d   : > { %v2583_v1 = vld [vmem:[%s3378_s22 + $0x30] sm:$0xff]  ;;  %224 = vrot.lane.b32.xlu0 %v2579_v0, %s3233_s21  ;;  %v2580_v3 = vld [vmem:[%s3378_s22 + $0x18] sm:$0xff]  ;;  %v3394_v5 = vand.u32 4294901760, %v216_v2  ;;  %v214_v9 = vld [vmem:[#allocation5 + $0x8] sm:$0xff]  ;;  %vm233_vm1 = vcmask 261120   ;;  %s3234_s17 = smov 32  }
  0x3e   : > { %776 = vrot.lane.b32.xlu1 %v2583_v1, %s3233_s21  ;;  %v2584_v4 = vld [vmem:[%s3378_s22 + $0x38] sm:$0xff]  ;;  %v215_v6 = vld [vmem:[#allocation5 + $0x10] sm:$0xff]  ;;  %v213_v10 = vld [vmem:[#allocation5] sm:$0xff]  ;;  %v3404_v11 = vand.u32 4294901760, %v214_v9  ;;  %s2578_s19 = sshll.u32 %s3374_s7, 5  ;;  %vm1328_vm2 = vcmask 523264  }
  0x3f   : > { %v3397_v7 = vsub.f32 %v216_v2, %v3394_v5  ;;  %v3399_v8 = vand.u32 4294901760, %v215_v6  ;;  %2746 = vmatprep.subr.mxu0 %v3394_v5  ;;  %v3406_v12 = vand.u32 4294901760, %v213_v10  ;;  %v2587_v13 = vld [vmem:[%s3378_s22 + $0x50] sm:$0xff]  ;;  %v2588_v14 = vld [vmem:[%s3378_s22 + $0x58] sm:$0xff]  ;;  %v217_v32 = vld [vmem:[%s3378_s22] sm:$0xff]  ;;  %s208_s28 = scalar_lea.vmem [#allocation7], %s2578_s19 }
  0x40   : > { %2747 = vmatpush3.msra.mxu0 %v3394_v5  ;;  %v3418_v17 = vsub.f32 %v214_v9, %v3404_v11  ;;  %v2591_v23 = vld [vmem:[%s3378_s22 + $0x70] sm:$0xff]  ;;  %v2592_v24 = vld [vmem:[%s3378_s22 + $0x78] sm:$0xff]  ;;  %v218_v36 = vld [vmem:[%s3378_s22 + $0x8] sm:$0xff]  ;;  %s2463_s23 = sshll.u32 %s208_s28, 4  ;;  %s2601_s24 = sshll.u32 %s3219_s12, 9  ;;  %s3741_s23 = int_to_ptr.vmem [resolvable:$true] %s2463_s23 }
  0x41   : > { %226 = vrot.lane.b32.xlu0 %v2580_v3, %s3233_s21  ;;  %v3411_v15 = vand.u32 4294901760, %v3397_v7  ;;  %v3414_v16 = vsub.f32 %v215_v6, %v3399_v8  ;;  %v3421_v18 = vsub.f32 %v213_v10, %v3406_v12  ;;  %2748 = vmatprep.subr.mxu0 %v3399_v8  ;;  %v2581_v47 = vld [vmem:[%s3378_s22 + $0x20] sm:$0xff]  ;;  %v2582_v56 = vld [vmem:[%s3378_s22 + $0x28] sm:$0xff]  ;;  %s3747_s18 = scalar_lea.hbm %s3800_s2, %s2601_s24  ;;  %s2445_s12 = scalar_lea.sflag [#allocation4], %s3374_s7 }
  0x42   : > { %778 = vrot.lane.b32.xlu1 %v2584_v4, %s3233_s21  ;;  %2749 = vmatpush3.msra.mxu0 %v3399_v8  ;;  %v3433_v21 = vand.u32 4294901760, %v3418_v17  ;;  %v2585_v3 = vld [vmem:[%s3378_s22 + $0x40] sm:$0xff]  ;;  %s3143_s30 = scalar_lea.vmem %s3741_s23, 512  ;;  %s3235_s6 = smov [#allocation7]  }
  0x43   : > { %v357_v19 = vsub.f32 %v3397_v7, %v3411_v15  ;;  %v3427_v20 = vand.u32 4294901760, %v3414_v16  ;;  %v3436_v22 = vand.u32 4294901760, %v3421_v18  ;;  %2750 = vmatprep.subr.mxu0 %v3404_v11  ;;  %p3144_p1 = scmp.ne.s32.totalorder %s3741_s23, %s3143_s30  ;;  %s3147_s3 = sshll.u32 %s3235_s6, 4  ;;  %s3148_s3 = int_to_ptr.vmem [resolvable:$false] %s3147_s3 }
  0x44   : > { %v371_v27 = vsub.f32 %v3418_v17, %v3433_v21  ;;  %2751 = vmatpush3.msra.mxu0 %v3404_v11  ;;  %s3149_s16 = scalar_lea.vmem %s3148_s3, 1024  ;;  %p3150_p0 = scmp.lt.s32.totalorder %s3741_s23, %s3148_s3 }
  0x45   : > { %1339 = vrot.lane.b32.xlu0 %v2587_v13, %s3233_s21  ;;  %v3440_v25 = vand.u32 4294901760, %v357_v19  ;;  %v364_v26 = vsub.f32 %v3414_v16, %v3427_v20  ;;  %v378_v28 = vsub.f32 %v3421_v18, %v3436_v22  ;;  %2752 = vmatprep.subr.mxu0 %v3406_v12  ;;  %v2586_v13 = vld [vmem:[%s3378_s22 + $0x48] sm:$0xff]  ;;  %p3145_p8 = pnand %p3144_p1, %p3343_p13  ;;  %p3151_p2 = scmp.lt.s32.totalorder %s3149_s16, %s3143_s30 }
  0x46   : > { %1341 = vrot.lane.b32.xlu1 %v2588_v14, %s3233_s21  ;;  %v3456_v30 = vand.u32 4294901760, %v371_v27  ;;  %2753 = vmatpush3.msra.mxu0 %v3406_v12 }
  0x47   : > { %2757 = vmatprep.subr.mxu1 %v3440_v25  ;;  %v3451_v29 = vand.u32 4294901760, %v364_v26  ;;  %v3461_v31 = vand.u32 4294901760, %v378_v28  ;;  %2768 = vmatprep.subr.mxu0 %v3397_v7  ;;  %p3146_p12 = pneg %p3145_p8  ;;  %p3152_p3 = por %p3151_p2, %p3150_p0 }
  0x48   : > { %2758 = vmatpush3.msra.mxu1 %v3440_v25 }
  0x49   : > { %1889 = vrot.lane.b32.xlu0 %v2591_v23, %s3233_s21  ;;  %2759 = vmatprep.subr.mxu1 %v3451_v29  ;;  %p3153_p5 = pnand %p3152_p3, %p3146_p12 }
  0x4a   : > { %1891 = vrot.lane.b32.xlu1 %v2592_v24, %s3233_s21  ;;  %2760 = vmatpush3.msra.mxu1 %v3451_v29 }
  0x4b   : > { %2761 = vmatprep.subr.mxu1 %v3456_v30 }
  0x4c   : > { %2762 = vmatpush3.msra.mxu1 %v3456_v30 }
  0x4d   : > { %2763 = vmatprep.subr.mxu1 %v3461_v31 }
  0x4e   : > { %2764 = vmatpush3.msra.mxu1 %v3461_v31 }
  0x4f   : > { %2779 = vmatprep.subr.mxu1 %v3394_v5 }
  0xaf   : > { %v225_v33 = vpop.permute.xlu0 %224 }
  0xb0   : > { %v231_v34 = vsel %vm230_vm0, %v217_v32, %v225_v33  ;;  %v777_v46 = vpop.permute.xlu1 %776 }
  0xb1   : > { %v235_v35 = vsel %vm233_vm1, %v231_v34, 0  ;;  %v782_v51 = vsel %vm230_vm0, %v2581_v47, %v777_v46 }
  0xb2   : > { %v309_v37 = vand.u32 4294901760, %v235_v35  ;;  %v785_v53 = vsel %vm233_vm1, %v782_v51, 0 }
  0xb3   : > { %v227_v38 = vpop.permute.xlu0 %226  ;;  %v3493_v54 = vand.u32 4294901760, %v785_v53 }
  0xb4   : > { %v310_v39 = vsub.f32 %v235_v35, %v309_v37  ;;  %v232_v40 = vsel %vm230_vm0, %v218_v36, %v227_v38  ;;  %2765 = vmatprep.mubr.f32.mxu1 %v309_v37  ;;  %v779_v55 = vpop.permute.xlu1 %778 }
  0xb5   : > { %v238_v41 = vsel %vm233_vm1, %v232_v40, 0  ;;  %v783_v57 = vsel %vm230_vm0, %v2582_v56, %v779_v55  ;;  %v3503_v58 = vsub.f32 %v785_v53, %v3493_v54 }
  0xb6   : > { %v3476_v42 = vand.u32 4294901760, %v238_v41  ;;  %v311_v43 = vand.u32 4294901760, %v310_v39  ;;  %v788_v59 = vsel %vm233_vm1, %v783_v57, 0 }
  0xb7   : > { %v861_v60 = vand.u32 4294901760, %v3503_v58  ;;  %v3516_v61 = vand.u32 4294901760, %v788_v59  ;;  %v1340_v4 = vpop.permute.xlu0 %1339 }
  0xb8   : > { %v320_v44 = vsub.f32 %v238_v41, %v3476_v42  ;;  %2766 = vmatmul.mubr.f32.vlgmr.msra.gmra.mxu1 %v3476_v42  ;;  %v312_v45 = vsub.f32 %v310_v39, %v311_v43  ;;  %v1345_v9 = vsel %vm230_vm0, %v2585_v3, %v1340_v4  ;;  %v1342_v14 = vpop.permute.xlu1 %1341 }
  0xb9   : > { %2780 = vmatpush3.msra.mxu1 %v3394_v5  ;;  %2787 = vmatprep.mubr.f32.mxu1 %v311_v43  ;;  %v862_v62 = vsub.f32 %v3503_v58, %v861_v60  ;;  %v3527_v63 = vsub.f32 %v788_v59, %v3516_v61  ;;  %v1348_v10 = vsel %vm233_vm1, %v1345_v9, 0  ;;  %v1346_v23 = vsel %vm230_vm0, %v2586_v13, %v1342_v14 }
  0xba   : > { %2781 = vmatprep.subr.mxu1 %v3399_v8  ;;  %v313_v48 = vand.u32 4294901760, %v312_v45  ;;  %v321_v49 = vand.u32 4294901760, %v320_v44  ;;  %v3573_v19 = vand.u32 4294901760, %v1348_v10  ;;  %v1351_v24 = vsel %vm233_vm1, %v1346_v23, 0 }
  0xbb   : > { %2782 = vmatpush3.msra.mxu1 %v3399_v8  ;;  %v863_v0 = vand.u32 4294901760, %v862_v62  ;;  %v871_v1 = vand.u32 4294901760, %v3527_v63  ;;  %v3588_v27 = vand.u32 4294901760, %v1351_v24  ;;  %v1890_v38 = vpop.permute.xlu0 %1889 }
  0xbc   : > { %2783 = vmatprep.subr.mxu1 %v3404_v11  ;;  %2754 = vmatprep.mubr.f32.mxu0 %v313_v48  ;;  %v322_v50 = vsub.f32 %v320_v44, %v321_v49  ;;  %v1423_v26 = vsub.f32 %v1348_v10, %v3573_v19  ;;  %v1892_v43 = vpop.permute.xlu1 %1891 }
  0xbd   : > { %2784 = vmatpush3.msra.mxu1 %v3404_v11  ;;  %v872_v2 = vsub.f32 %v3527_v63, %v871_v1  ;;  %v3599_v32 = vsub.f32 %v1351_v24, %v3588_v27 }
  0xbe   : > { %2785 = vmatprep.subr.mxu1 %v3406_v12  ;;  %v323_v52 = vand.u32 4294901760, %v322_v50  ;;  %v1424_v28 = vand.u32 4294901760, %v1423_v26 }
  0xbf   : > { %2786 = vmatpush3.msra.mxu1 %v3406_v12  ;;  %v873_v6 = vand.u32 4294901760, %v872_v2  ;;  %v1434_v34 = vand.u32 4294901760, %v3599_v32 }
  0xc0   : > { %2788 = vmatmul.mubr.f32.vlgmr.msra.gmra.mxu1 %v321_v49  ;;  %2801 = vmatprep.subr.mxu1 %v3394_v5  ;;  %v1425_v33 = vsub.f32 %v1423_v26, %v1424_v28 }
  0xc1   : > { %2755 = vmatmul.mubr.f32.vlgmr.msra.gmra.mxu0 %v323_v52  ;;  %2802 = vmatpush3.msra.mxu1 %v3394_v5  ;;  %v1435_v36 = vsub.f32 %v3599_v32, %v1434_v34 }
  0xc2   : > { %2769 = vmatpush3.msra.mxu0 %v3397_v7  ;;  %2809 = vmatprep.mubr.f32.mxu1 %v309_v37  ;;  %v1426_v35 = vand.u32 4294901760, %v1425_v33 }
  0xc3   : > { %2770 = vmatprep.subr.mxu0 %v3414_v16  ;;  %2776 = vmatprep.mubr.f32.mxu0 %v310_v39  ;;  %v1436_v39 = vand.u32 4294901760, %v1435_v36 }
  0xc4   : > { %2803 = vmatprep.subr.mxu1 %v3399_v8  ;;  %2771 = vmatpush3.msra.mxu0 %v3414_v16 }
  0xc5   : > { %2804 = vmatpush3.msra.mxu1 %v3399_v8  ;;  %2772 = vmatprep.subr.mxu0 %v3418_v17 }
  0xc6   : > { %2805 = vmatprep.subr.mxu1 %v3404_v11  ;;  %2773 = vmatpush3.msra.mxu0 %v3418_v17 }
  0xc7   : > { %2806 = vmatpush3.msra.mxu1 %v3404_v11  ;;  %2774 = vmatprep.subr.mxu0 %v3421_v18 }
  0xc8   : > { %2807 = vmatprep.subr.mxu1 %v3406_v12  ;;  %2775 = vmatpush3.msra.mxu0 %v3421_v18 }
  0xc9   : > { %2808 = vmatpush3.msra.mxu1 %v3406_v12  ;;  %2777 = vmatmul.mubr.f32.vlgmr.msra.gmra.mxu0 %v320_v44 }
  0xca   : > { %2790 = vmatprep.subr.mxu0 %v3411_v15  ;;  %2810 = vmatmul.mubr.f32.vlgmr.msra.gmra.mxu1 %v3476_v42 }
  0xcb   : > { %2823 = vmatprep.subr.mxu1 %v3440_v25  ;;  %2791 = vmatpush3.msra.mxu0 %v3411_v15 }
  0xcc   : > { %2798 = vmatprep.mubr.f32.mxu0 %v309_v37  ;;  %2824 = vmatpush3.msra.mxu1 %v3440_v25  ;;  %v2589_v37 = vld [vmem:[%s3378_s22 + $0x60] sm:$0xff] }
  0xcd   : > { %2792 = vmatprep.subr.mxu0 %v3427_v20  ;;  %2825 = vmatprep.subr.mxu1 %v3451_v29  ;;  %v1895_v40 = vsel %vm230_vm0, %v2589_v37, %v1890_v38 }
  0xce   : > { %2793 = vmatpush3.msra.mxu0 %v3427_v20  ;;  %2826 = vmatpush3.msra.mxu1 %v3451_v29  ;;  %v1898_v41 = vsel %vm233_vm1, %v1895_v40, 0 }
  0xcf   : > { %2794 = vmatprep.subr.mxu0 %v3433_v21  ;;  %2827 = vmatprep.subr.mxu1 %v3456_v30  ;;  %v3644_v44 = vand.u32 4294901760, %v1898_v41 }
  0xd0   : > { %2795 = vmatpush3.msra.mxu0 %v3433_v21  ;;  %2828 = vmatpush3.msra.mxu1 %v3456_v30 }
  0xd1   : > { %2831 = vmatprep.mubr.f32.mxu1 %v3493_v54  ;;  %2796 = vmatprep.subr.mxu0 %v3436_v22  ;;  %v1973_v47 = vsub.f32 %v1898_v41, %v3644_v44 }
  0xd2   : > { %2829 = vmatprep.subr.mxu1 %v3461_v31  ;;  %2797 = vmatpush3.msra.mxu0 %v3436_v22 }
  0xd3   : > { %2830 = vmatpush3.msra.mxu1 %v3461_v31  ;;  %2799 = vmatmul.mubr.f32.vlgmr.msra.gmra.mxu0 %v3476_v42  ;;  %v2590_v42 = vld [vmem:[%s3378_s22 + $0x68] sm:$0xff]  ;;  %v1974_v49 = vand.u32 4294901760, %v1973_v47 }
  0xd4   : > { %2812 = vmatprep.subr.mxu0 %v3394_v5  ;;  %2832 = vmatmul.mubr.f32.vlgmr.msra.gmra.mxu1 %v3516_v61  ;;  %v1896_v45 = vsel %vm230_vm0, %v2590_v42, %v1892_v43 }
  0xd5   : > { %2845 = vmatprep.subr.mxu1 %v3394_v5  ;;  %2813 = vmatpush3.msra.mxu0 %v3394_v5  ;;  %v1901_v46 = vsel %vm233_vm1, %v1896_v45, 0 }
  0xd6   : > { %2820 = vmatprep.mubr.f32.mxu0 %v863_v0  ;;  %2846 = vmatpush3.msra.mxu1 %v3394_v5  ;;  %v3659_v48 = vand.u32 4294901760, %v1901_v46 }
  0xd7   : > { %2853 = vmatprep.mubr.f32.mxu1 %v861_v60  ;;  %2814 = vmatprep.subr.mxu0 %v3399_v8 }
  0xd8   : > { %2847 = vmatprep.subr.mxu1 %v3399_v8  ;;  %2815 = vmatpush3.msra.mxu0 %v3399_v8  ;;  %v1983_v50 = vsub.f32 %v1901_v46, %v3659_v48 }
  0xd9   : > { %2848 = vmatpush3.msra.mxu1 %v3399_v8  ;;  %2816 = vmatprep.subr.mxu0 %v3404_v11 }
  0xda   : > { %2849 = vmatprep.subr.mxu1 %v3404_v11  ;;  %2817 = vmatpush3.msra.mxu0 %v3404_v11 }
  0xdb   : > { %2850 = vmatpush3.msra.mxu1 %v3404_v11  ;;  %2818 = vmatprep.subr.mxu0 %v3406_v12 }
  0xdc   : > { %2851 = vmatprep.subr.mxu1 %v3406_v12  ;;  %2819 = vmatpush3.msra.mxu0 %v3406_v12 }
  0xdd   : > { %2852 = vmatpush3.msra.mxu1 %v3406_v12  ;;  %2821 = vmatmul.mubr.f32.vlgmr.msra.gmra.mxu0 %v873_v6 }
  0xde   : > { %2834 = vmatprep.subr.mxu0 %v3397_v7  ;;  %2854 = vmatmul.mubr.f32.vlgmr.msra.gmra.mxu1 %v871_v1 }
  0xdf   : > { %2867 = vmatprep.subr.mxu1 %v3394_v5  ;;  %2835 = vmatpush3.msra.mxu0 %v3397_v7 }
  0xe0   : > { %2842 = vmatprep.mubr.f32.mxu0 %v3503_v58  ;;  %2868 = vmatpush3.msra.mxu1 %v3394_v5 }
  0xe1   : > { %2875 = vmatprep.mubr.f32.mxu1 %v3493_v54  ;;  %2836 = vmatprep.subr.mxu0 %v3414_v16 }
  0xe2   : > { %2869 = vmatprep.subr.mxu1 %v3399_v8  ;;  %2837 = vmatpush3.msra.mxu0 %v3414_v16 }
  0xe3   : > { %2870 = vmatpush3.msra.mxu1 %v3399_v8  ;;  %2838 = vmatprep.subr.mxu0 %v3418_v17 }
  0xe4   : > { %2871 = vmatprep.subr.mxu1 %v3404_v11  ;;  %2839 = vmatpush3.msra.mxu0 %v3418_v17 }
  0xe5   : > { %2872 = vmatpush3.msra.mxu1 %v3404_v11  ;;  %2840 = vmatprep.subr.mxu0 %v3421_v18 }
  0xe6   : > { %2873 = vmatprep.subr.mxu1 %v3406_v12  ;;  %2841 = vmatpush3.msra.mxu0 %v3421_v18 }
  0xe7   : > { %2874 = vmatpush3.msra.mxu1 %v3406_v12  ;;  %2843 = vmatmul.mubr.f32.vlgmr.msra.gmra.mxu0 %v3527_v63 }
  0xe8   : > { %2856 = vmatprep.subr.mxu0 %v3411_v15  ;;  %2876 = vmatmul.mubr.f32.vlgmr.msra.gmra.mxu1 %v3516_v61 }
  0xe9   : > { %2889 = vmatprep.subr.mxu1 %v3440_v25  ;;  %2857 = vmatpush3.msra.mxu0 %v3411_v15 }
  0xea   : > { %2864 = vmatprep.mubr.f32.mxu0 %v3493_v54  ;;  %2890 = vmatpush3.msra.mxu1 %v3440_v25 }
  0xeb   : > { %2858 = vmatprep.subr.mxu0 %v3427_v20  ;;  %2891 = vmatprep.subr.mxu1 %v3451_v29 }
  0xec   : > { %2859 = vmatpush3.msra.mxu0 %v3427_v20  ;;  %2892 = vmatpush3.msra.mxu1 %v3451_v29 }
  0xed   : > { %2860 = vmatprep.subr.mxu0 %v3433_v21  ;;  %2893 = vmatprep.subr.mxu1 %v3456_v30 }
  0xee   : > { %2861 = vmatpush3.msra.mxu0 %v3433_v21  ;;  %2894 = vmatpush3.msra.mxu1 %v3456_v30 }
  0xef   : > { %2862 = vmatprep.subr.mxu0 %v3436_v22  ;;  %2895 = vmatprep.subr.mxu1 %v3461_v31 }
  0xf0   : > { %2863 = vmatpush3.msra.mxu0 %v3436_v22  ;;  %2896 = vmatpush3.msra.mxu1 %v3461_v31 }
  0xf1   : > { %2897 = vmatprep.mubr.f32.mxu1 %v3573_v19  ;;  %2865 = vmatmul.mubr.f32.vlgmr.msra.gmra.mxu0 %v3516_v61 }
  0xf2   : > { %2878 = vmatprep.subr.mxu0 %v3394_v5  ;;  %2898 = vmatmul.mubr.f32.vlgmr.msra.gmra.mxu1 %v3588_v27 }
  0xf3   : > { %2911 = vmatprep.subr.mxu1 %v3394_v5  ;;  %2879 = vmatpush3.msra.mxu0 %v3394_v5 }
  0xf4   : > { %2912 = vmatpush3.msra.mxu1 %v3394_v5  ;;  %2880 = vmatprep.subr.mxu0 %v3399_v8 }
  0xf5   : > { %2913 = vmatprep.subr.mxu1 %v3399_v8  ;;  %2919 = vmatprep.mubr.f32.mxu1 %v1424_v28 }
  0xf6   : > { %2881 = vmatpush3.msra.mxu0 %v3399_v8  ;;  %2914 = vmatpush3.msra.mxu1 %v3399_v8 }
  0xf7   : > { %2882 = vmatprep.subr.mxu0 %v3404_v11  ;;  %2886 = vmatprep.mubr.f32.mxu0 %v1426_v35 }
  0xf8   : > { %2915 = vmatprep.subr.mxu1 %v3404_v11  ;;  %2883 = vmatpush3.msra.mxu0 %v3404_v11 }
  0xf9   : > { %2916 = vmatpush3.msra.mxu1 %v3404_v11  ;;  %2884 = vmatprep.subr.mxu0 %v3406_v12 }
  0xfa   : > { %2917 = vmatprep.subr.mxu1 %v3406_v12  ;;  %2885 = vmatpush3.msra.mxu0 %v3406_v12 }
  0xfb   : > { %2918 = vmatpush3.msra.mxu1 %v3406_v12  ;;  %2887 = vmatmul.mubr.f32.vlgmr.msra.gmra.mxu0 %v1436_v39 }
  0xfc   : > { %2900 = vmatprep.subr.mxu0 %v3397_v7  ;;  %2920 = vmatmul.mubr.f32.vlgmr.msra.gmra.mxu1 %v1434_v34 }
  0xfd   : > { %2933 = vmatprep.subr.mxu1 %v3394_v5  ;;  %2901 = vmatpush3.msra.mxu0 %v3397_v7 }
  0xfe   : > { %2908 = vmatprep.mubr.f32.mxu0 %v1423_v26  ;;  %2934 = vmatpush3.msra.mxu1 %v3394_v5 }
  0xff   : > { %2941 = vmatprep.mubr.f32.mxu1 %v3573_v19  ;;  %2902 = vmatprep.subr.mxu0 %v3414_v16 }
 0x100   : > { %2935 = vmatprep.subr.mxu1 %v3399_v8  ;;  %2903 = vmatpush3.msra.mxu0 %v3414_v16 }
 0x101   : > { %2936 = vmatpush3.msra.mxu1 %v3399_v8  ;;  %2904 = vmatprep.subr.mxu0 %v3418_v17 }
 0x102   : > { %2937 = vmatprep.subr.mxu1 %v3404_v11  ;;  %2905 = vmatpush3.msra.mxu0 %v3418_v17 }
 0x103   : > { %2938 = vmatpush3.msra.mxu1 %v3404_v11  ;;  %2906 = vmatprep.subr.mxu0 %v3421_v18 }
 0x104   : > { %2939 = vmatprep.subr.mxu1 %v3406_v12  ;;  %2907 = vmatpush3.msra.mxu0 %v3421_v18 }
 0x105   : > { %2940 = vmatpush3.msra.mxu1 %v3406_v12  ;;  %2909 = vmatmul.mubr.f32.vlgmr.msra.gmra.mxu0 %v3599_v32 }
 0x106   : > { %2922 = vmatprep.subr.mxu0 %v3411_v15  ;;  %2942 = vmatmul.mubr.f32.vlgmr.msra.gmra.mxu1 %v3588_v27 }
 0x107   : > { %2955 = vmatprep.subr.mxu1 %v3440_v25  ;;  %2923 = vmatpush3.msra.mxu0 %v3411_v15 }
 0x108   : > { %2930 = vmatprep.mubr.f32.mxu0 %v3573_v19  ;;  %2956 = vmatpush3.msra.mxu1 %v3440_v25  ;;  %v1975_v25 = vsub.f32 %v1973_v47, %v1974_v49 }
 0x109   : > { %2924 = vmatprep.subr.mxu0 %v3427_v20  ;;  %2957 = vmatprep.subr.mxu1 %v3451_v29 }
 0x10a   : > { %2925 = vmatpush3.msra.mxu0 %v3427_v20  ;;  %2958 = vmatpush3.msra.mxu1 %v3451_v29  ;;  %v1984_v29 = vand.u32 4294901760, %v1983_v50 }
 0x10b   : > { %2926 = vmatprep.subr.mxu0 %v3433_v21  ;;  %2959 = vmatprep.subr.mxu1 %v3456_v30 }
 0x10c   : > { %2927 = vmatpush3.msra.mxu0 %v3433_v21  ;;  %2960 = vmatpush3.msra.mxu1 %v3456_v30  ;;  %v1976_v30 = vand.u32 4294901760, %v1975_v25 }
 0x10d   : > { %2928 = vmatprep.subr.mxu0 %v3436_v22  ;;  %2961 = vmatprep.subr.mxu1 %v3461_v31 }
 0x10e   : > { %2929 = vmatpush3.msra.mxu0 %v3436_v22  ;;  %2962 = vmatpush3.msra.mxu1 %v3461_v31  ;;  %v1985_v31 = vsub.f32 %v1983_v50, %v1984_v29 }
 0x10f   : > { %2963 = vmatprep.mubr.f32.mxu1 %v3644_v44  ;;  %2931 = vmatmul.mubr.f32.vlgmr.msra.gmra.mxu0 %v3588_v27 }
 0x110   : > { %2944 = vmatprep.subr.mxu0 %v3394_v5  ;;  %2964 = vmatmul.mubr.f32.vlgmr.msra.gmra.mxu1 %v3659_v48  ;;  %v1986_v51 = vand.u32 4294901760, %v1985_v31 }
 0x111   : > { %2977 = vmatprep.subr.mxu1 %v3394_v5  ;;  %2945 = vmatpush3.msra.mxu0 %v3394_v5 }
 0x112   : > { %2978 = vmatpush3.msra.mxu1 %v3394_v5  ;;  %2946 = vmatprep.subr.mxu0 %v3399_v8 }
 0x113   : > { %2979 = vmatprep.subr.mxu1 %v3399_v8  ;;  %2985 = vmatprep.mubr.f32.mxu1 %v1974_v49 }
 0x114   : > { %2947 = vmatpush3.msra.mxu0 %v3399_v8  ;;  %2980 = vmatpush3.msra.mxu1 %v3399_v8 }
 0x115   : > { %2948 = vmatprep.subr.mxu0 %v3404_v11  ;;  %2952 = vmatprep.mubr.f32.mxu0 %v1976_v30 }
 0x116   : > { %2981 = vmatprep.subr.mxu1 %v3404_v11  ;;  %2949 = vmatpush3.msra.mxu0 %v3404_v11 }
 0x117   : > { %2982 = vmatpush3.msra.mxu1 %v3404_v11  ;;  %2950 = vmatprep.subr.mxu0 %v3406_v12 }
 0x118   : > { %2983 = vmatprep.subr.mxu1 %v3406_v12  ;;  %2951 = vmatpush3.msra.mxu0 %v3406_v12 }
 0x119   : > { %2984 = vmatpush3.msra.mxu1 %v3406_v12  ;;  %2953 = vmatmul.mubr.f32.vlgmr.msra.gmra.mxu0 %v1986_v51 }
 0x11a   : > { %2966 = vmatprep.subr.mxu0 %v3397_v7  ;;  %2986 = vmatmul.mubr.f32.vlgmr.msra.gmra.mxu1 %v1984_v29 }
 0x11b   : > { %2999 = vmatprep.subr.mxu1 %v3394_v5  ;;  %2967 = vmatpush3.msra.mxu0 %v3397_v7 }
 0x11c   : > { %2974 = vmatprep.mubr.f32.mxu0 %v1973_v47  ;;  %3000 = vmatpush3.msra.mxu1 %v3394_v5 }
 0x11d   : > { %3007 = vmatprep.mubr.f32.mxu1 %v3644_v44  ;;  %2968 = vmatprep.subr.mxu0 %v3414_v16 }
 0x11e   : > { %3001 = vmatprep.subr.mxu1 %v3399_v8  ;;  %2969 = vmatpush3.msra.mxu0 %v3414_v16 }
 0x11f   : > { %3002 = vmatpush3.msra.mxu1 %v3399_v8  ;;  %2970 = vmatprep.subr.mxu0 %v3418_v17 }
 0x120   : > { %3003 = vmatprep.subr.mxu1 %v3404_v11  ;;  %2971 = vmatpush3.msra.mxu0 %v3418_v17 }
 0x121   : > { %3004 = vmatpush3.msra.mxu1 %v3404_v11  ;;  %2972 = vmatprep.subr.mxu0 %v3421_v18 }
 0x122   : > { %3005 = vmatprep.subr.mxu1 %v3406_v12  ;;  %2973 = vmatpush3.msra.mxu0 %v3421_v18 }
 0x123   : > { %3006 = vmatpush3.msra.mxu1 %v3406_v12  ;;  %2975 = vmatmul.mubr.f32.vlgmr.msra.gmra.mxu0 %v1983_v50 }
 0x124   : > { %2988 = vmatprep.subr.mxu0 %v3411_v15  ;;  %3008 = vmatmul.mubr.f32.vlgmr.msra.gmra.mxu1 %v3659_v48 }
 0x125   : > { %2989 = vmatpush3.msra.mxu0 %v3411_v15  ;;  %2996 = vmatprep.mubr.f32.mxu0 %v3644_v44 }
 0x126   : > { %2990 = vmatprep.subr.mxu0 %v3427_v20 }
 0x127   : > { %2991 = vmatpush3.msra.mxu0 %v3427_v20 }
 0x128   : > { %2992 = vmatprep.subr.mxu0 %v3433_v21 }
 0x129   : > { %2993 = vmatpush3.msra.mxu0 %v3433_v21 }
 0x12a   : > { %2994 = vmatprep.subr.mxu0 %v3436_v22 }
 0x12b   : > { %2995 = vmatpush3.msra.mxu0 %v3436_v22 }
 0x12c   : > { %2997 = vmatmul.mubr.f32.vlgmr.msra.gmra.mxu0 %v3659_v48 }
 0x178   : > { %v2767_v5 = vpop.f32.mrf.mxu1 }
 0x17a   : > { %v416_v11 = vpop.f32.mrf.mxu1 }
 0x180   : > { %v2789_v16 = vpop.f32.mrf.mxu1 }
 0x181   : > { %v2756_v7 = vpop.f32.mrf.mxu0 }
 0x182   : > { %v423_v8 = vadd.f32 %v2767_v5, %v2756_v7  ;;  %v586_v54 = vpop.f32.mrf.mxu1 }
 0x183   : > { %v315_v12 = vpop.f32.mrf.mxu0 }
 0x184   : > { %v417_v15 = vadd.f32 %v416_v11, %v315_v12 }
 0x189   : > { %v2778_v17 = vpop.f32.mrf.mxu0 }
 0x18a   : > { %v510_v18 = vadd.f32 %v2778_v17, %v423_v8  ;;  %v2811_v55 = vpop.f32.mrf.mxu1 }
 0x18b   : > { %v502_v20 = vpop.f32.mrf.mxu0 }
 0x18c   : > { %v503_v52 = vadd.f32 %v502_v20, %v417_v15  ;;  %v595_v53 = vadd.f32 %v2789_v16, %v510_v18  ;;  %v758_v60 = vpop.f32.mrf.mxu1 }
 0x18e   : > { %v587_v21 = vadd.f32 %v586_v54, %v503_v52 }
 0x193   : > { %v2800_v56 = vpop.f32.mrf.mxu0 }
 0x194   : > { %v684_v57 = vadd.f32 %v2800_v56, %v595_v53  ;;  %v2833_v63 = vpop.f32.mrf.mxu1 }
 0x195   : > { %v677_v22 = vpop.f32.mrf.mxu0 }
 0x196   : > { %v3725_v58 = vadd.f32 %v2811_v55, %v684_v57  ;;  %v678_v59 = vadd.f32 %v677_v22, %v587_v21  ;;  %v966_v2 = vpop.f32.mrf.mxu1 }
 0x198   : > { %v3727_v61 = vadd.f32 %v758_v60, %v678_v59 }
 0x19d   : > { %v2822_v62 = vpop.f32.mrf.mxu0 }
 0x19e   : > { %v973_v3 = vadd.f32 %v2833_v63, %v2822_v62  ;;  %v2855_v4 = vpop.f32.mrf.mxu1 }
 0x19f   : > { %v865_v0 = vpop.f32.mrf.mxu0 }
 0x1a0   : > { %v967_v9 = vadd.f32 %v966_v2, %v865_v0  ;;  %v1136_v14 = vpop.f32.mrf.mxu1 }
 0x1a7   : > { %v2844_v1 = vpop.f32.mrf.mxu0 }
 0x1a8   : > { %v1060_v10 = vadd.f32 %v2844_v1, %v973_v3  ;;  %v2877_v23 = vpop.f32.mrf.mxu1 }
 0x1a9   : > { %v1052_v6 = vpop.f32.mrf.mxu0 }
 0x1aa   : > { %v1053_v13 = vadd.f32 %v1052_v6, %v967_v9  ;;  %v1145_v19 = vadd.f32 %v2855_v4, %v1060_v10  ;;  %v1308_v34 = vpop.f32.mrf.mxu1 }
 0x1ac   : > { %v1137_v27 = vadd.f32 %v1136_v14, %v1053_v13 }
 0x1b1   : > { %v2866_v24 = vpop.f32.mrf.mxu0 }
 0x1b2   : > { %v1234_v26 = vadd.f32 %v2866_v24, %v1145_v19  ;;  %v2899_v36 = vpop.f32.mrf.mxu1 }
 0x1b3   : > { %v1227_v28 = vpop.f32.mrf.mxu0 }
 0x1b4   : > { %v1315_v32 = vadd.f32 %v2877_v23, %v1234_v26  ;;  %v1228_v33 = vadd.f32 %v1227_v28, %v1137_v27  ;;  %v1529_v39 = vpop.f32.mrf.mxu1 }
 0x1b6   : > { %v1309_v35 = vadd.f32 %v1308_v34, %v1228_v33  ;;  %1322 = vrot.lane.b32.xlu1 %v1315_v32, %s3234_s17 }
 0x1b8   : > { %1320 = vrot.lane.b32.xlu0 %v1309_v35, %s3234_s17 }
 0x1bb   : > { %v2888_v37 = vpop.f32.mrf.mxu0 }
 0x1bc   : > { %v1536_v38 = vadd.f32 %v2899_v36, %v2888_v37  ;;  %v2921_v42 = vpop.f32.mrf.mxu1 }
 0x1bd   : > { %v1428_v40 = vpop.f32.mrf.mxu0 }
 0x1be   : > { %v1530_v41 = vadd.f32 %v1529_v39, %v1428_v40  ;;  %v1699_v48 = vpop.f32.mrf.mxu1 }
 0x1c5   : > { %v2910_v43 = vpop.f32.mrf.mxu0 }
 0x1c6   : > { %v1623_v44 = vadd.f32 %v2910_v43, %v1536_v38  ;;  %v2943_v50 = vpop.f32.mrf.mxu1 }
 0x1c7   : > { %v1615_v45 = vpop.f32.mrf.mxu0 }
 0x1c8   : > { %v1616_v46 = vadd.f32 %v1615_v45, %v1530_v41  ;;  %v1708_v47 = vadd.f32 %v2921_v42, %v1623_v44  ;;  %v1871_v5 = vpop.f32.mrf.mxu1 }
 0x1ca   : > { %v1700_v49 = vadd.f32 %v1699_v48, %v1616_v46 }
 0x1cf   : > { %v2932_v25 = vpop.f32.mrf.mxu0 }
 0x1d0   : > { %v1797_v29 = vadd.f32 %v2932_v25, %v1708_v47  ;;  %v2965_v11 = vpop.f32.mrf.mxu1 }
 0x1d1   : > { %v1790_v30 = vpop.f32.mrf.mxu0 }
 0x1d2   : > { %v1878_v31 = vadd.f32 %v2943_v50, %v1797_v29  ;;  %v1791_v51 = vadd.f32 %v1790_v30, %v1700_v49  ;;  %v2079_v16 = vpop.f32.mrf.mxu1 }
 0x1d4   : > { %v1872_v7 = vadd.f32 %v1871_v5, %v1791_v51 }
 0x1d9   : > { %v2954_v8 = vpop.f32.mrf.mxu0 }
 0x1da   : > { %v2086_v17 = vadd.f32 %v2965_v11, %v2954_v8  ;;  %v2987_v18 = vpop.f32.mrf.mxu1 }
 0x1db   : > { %v1978_v12 = vpop.f32.mrf.mxu0 }
 0x1dc   : > { %v2080_v52 = vadd.f32 %v2079_v16, %v1978_v12  ;;  %v2249_v21 = vpop.f32.mrf.mxu1 }
 0x1e3   : > { %v2976_v15 = vpop.f32.mrf.mxu0 }
 0x1e4   : > { %v2173_v53 = vadd.f32 %v2976_v15, %v2086_v17  ;;  %v3009_v56 = vpop.f32.mrf.mxu1 }
 0x1e5   : > { %v2165_v20 = vpop.f32.mrf.mxu0 }
 0x1e6   : > { %v2166_v54 = vadd.f32 %v2165_v20, %v2080_v52  ;;  %v2258_v55 = vadd.f32 %v2987_v18, %v2173_v53  ;;  %v2421_v0 = vpop.f32.mrf.mxu1 }
 0x1e8   : > { %v2250_v59 = vadd.f32 %v2249_v21, %v2166_v54 }
 0x1ec   : > { %v2998_v57 = vpop.f32.mrf.mxu0 }
 0x1ed   : > { %v2347_v22 = vadd.f32 %v2998_v57, %v2258_v55 }
 0x1ee   : > { %v2340_v60 = vpop.f32.mrf.mxu0 }
 0x1ef   : > { %v2428_v62 = vadd.f32 %v3009_v56, %v2347_v22  ;;  %v2341_v63 = vadd.f32 %v2340_v60, %v2250_v59 }
 0x1f1   : > { %v2422_v1 = vadd.f32 %v2421_v0, %v2341_v63  ;;  %2435 = vrot.lane.b32.xlu1 %v2428_v62, %s3234_s17 }
 0x1f3   : > { %2433 = vrot.lane.b32.xlu0 %v2422_v1, %s3234_s17 }
 0x228   : > { %v1323_v2 = vpop.permute.xlu1 %1322 }
 0x229   : > { %v1327_v3 = vsel %vm233_vm1, %v3725_v58, %v1323_v2 }
 0x22a   : > { %1330 = vst.msk [vmem:[%s208_s28 + $0x8] sm:$0xff] %vm1328_vm2, %v1327_v3  ;;  %v1321_v4 = vpop.permute.xlu0 %1320 }
 0x22b   : > { %v1326_v6 = vsel %vm233_vm1, %v3727_v61, %v1321_v4 }
 0x22c   : > { %1329 = vst.msk [vmem:[%s208_s28] sm:$0xff] %vm1328_vm2, %v1326_v6 }
 0x263   : > { %v2436_v9 = vpop.permute.xlu1 %2435 }
 0x264   : > { %v2440_v58 = vsel %vm233_vm1, %v1878_v31, %v2436_v9 }
 0x265   : > { %2594 = vst.msk [vmem:[%s208_s28 + $0x18] sm:$0xff] %vm1328_vm2, %v2440_v58  ;;  %v2434_v61 = vpop.permute.xlu0 %2433 }
 0x266   : > { %v2439_v10 = vsel %vm233_vm1, %v1872_v7, %v2434_v61 }
 0x267   : > { %2593 = vst.msk [vmem:[%s208_s28 + $0x10] sm:$0xff] %vm1328_vm2, %v2439_v10 }
 0x268   : > { %3156 = shalt.err (!%p3153_p5)
}
 0x269   : > { %s3157_s4 = scalar_lea.hbm %s3747_s18, 512  ;;  %s3161_s22 = scalar_lea.hbm %s3800_s2, 1024 }
 0x26a   : > { %p3158_p7 = scmp.ne.s32.totalorder %s3747_s18, %s3157_s4  ;;  %p3162_p9 = scmp.lt.s32.totalorder %s3747_s18, %s3800_s2 }
 0x26b   : > { %p3163_p11 = scmp.lt.s32.totalorder %s3161_s22, %s3157_s4 }
 0x26c   : > { %p3159_p4 = pnand %p3158_p7, %p3343_p13 }
 0x26d   : > { %p3164_p10 = por %p3163_p11, %p3162_p9 }
 0x26e   : > { %p3160_p6 = pneg %p3159_p4 }
 0x270   : > { %p3165_p1 = pnand %p3164_p10, %p3160_p6 }
 0x272   : > { %3168 = shalt.err (!%p3165_p1)
}
 0x273   : > { %s3236_s19 = smov 128   ;;  %s3237_s28 = smov 8  }
 0x274   : > { %3016 = dma.vmem_to_hbm [thread:$0]  (%p3343_p13), %s3741_s23, 512, %s3747_s18, %s2445_s12, %s3236_s19, %s3236_s19, %s3237_s28  }
 0x275 PF: > { %s2478_s24 = sand.u32 1, %s3207_s9   ;;  %p3814_p8 = scmp.ne.s32.totalorder %s3806_s20, 0 }
 0x276   : > { %p3815_p12 = scmp.ge.s32.totalorder %s3227_s14, 2  ;;  %s2479_s26 = scalar_lea.sflag [#allocation4], %s2478_s24 }
 0x278   : > { %p3027_p0 = pnand %p3815_p12, %p3814_p8 }
 0x27a   : > { %p3028_p2 = pneg %p3027_p0 }
 0x27c   : > { %3202 = dma.done.wait (%p3028_p2), %s2479_s26, 512  }
 0x27d   : > { %3204 = vsyncadd (%p3028_p2), %s2479_s26, 4294966784  ;;  %s19_s14 = sadd.s32 1, %s3227_s14   ;;  %s3816_s9 = smov %s3211_s10 }
 0x27e   : > { %p16_p3 = scmp.ge.s32.totalorder %s19_s14, 4   ;;  %s3817_s10 = smov %s3215_s11 }
 0x27f   : > { %s3818_s11 = smov %s3352_s15  ;;  %s3819_s12 = smov %s3223_s13 }
 0x280   : > { %s3820_s13 = smov %s3822_s25  ;;  %18 = sbr.rel (!%p16_p3) target bundleno = 7 (0x7), region = 85 }
 0x285   :  { %2484 = vsyncpa [#allocation3], 1 }
 0x286   :  { %2486 = vsyncpa [#allocation3 + $0x1], 1 }
 0x287   :  { %2487 = vsyncpa [#allocation6], 1 }
 0x288   :  { %2488 = vsyncpa [#allocation4], 1 }
 0x289   :  { %2490 = vsyncpa [#allocation4 + $0x1], 1 }

</bundles_post_ra>
